<compile_context>
chip_gen: v6e
topology: v6e:2x2x1
jax: 0.10.0
libtpu: 0.0.40
codegen_flags: <defaults>
</compile_context>

<pallas_src>
import numpy as np
import jax
import jax.numpy as jnp
from jax import lax
from jax.experimental import pallas as pl
from jax.experimental.pallas import tpu as pltpu

IN_DIM = 16               # 1 (method id) + 15 (state)
STATE_DIM = IN_DIM - 1
HIDDEN = 32
N_CAND = 3                # candidate method ids 0, 1, 2
TB_CAP = 2048             # max lanes per batch tile (sweepable 1024-8192; VMEM use is tiny)


def _choose_tile(B):
    """Batch tile width: big enough to amortize per-step overhead, but keep >=2 grid tiles
    when possible so v7x's two TensorCores both get work (no effect on v5e/v6e)."""
    half = pl.cdiv(max(int(B), 1), 2)
    half_rounded = pl.cdiv(half, 128) * 128
    return int(max(128, min(TB_CAP, half_rounded)))


def actor_kernel(u_ref, st_ref, w1s_ref, bias3_ref, w2_ref, out_ref):
    # Shared first-layer matmul over the state features (bf16 x bf16 -> f32 accumulate,
    # the native single-pass MXU mode on all generations). The method id only enters as a
    # per-candidate bias shift: W1^T @ [c; s] = W1^T_state @ s + (b1 + c * w1_id_col),
    # and that bias is pre-folded on the host into bias3[:, c].
    st = st_ref[...]                                               # (STATE_DIM, TB) bf16
    base = jnp.dot(w1s_ref[...], st,
                   preferred_element_type=jnp.float32)             # (HIDDEN, TB) f32

    w2row = w2_ref[...]                                            # (1, HIDDEN) f32
    scores = []
    for c in range(N_CAND):
        h = jnp.maximum(base + bias3_ref[:, c:c + 1], 0.0)         # (HIDDEN, TB) f32
        # Second layer on the MXU (extended slot has slack; frees VALU/XLU).
        scores.append(jnp.dot(w2row, h,
                              preferred_element_type=jnp.float32))  # (1, TB)
    s = jnp.concatenate(scores, axis=0)                            # (N_CAND, TB)
    # NOTE: b2 is intentionally dropped; softmax / log_prob / entropy are shift-invariant.

    # Softmax over the 3 candidates (sublane axis). approx reciprocal -> EUP slot; the
    # O(2^-12) bias is shared consistently by probs, the sampling CDF and entropy, while
    # log_prob uses the exact log(z) path.
    m = jnp.max(s, axis=0, keepdims=True)                          # (1, TB)
    e = jnp.exp(s - m)                                             # (N_CAND, TB)
    z = jnp.sum(e, axis=0, keepdims=True)                          # (1, TB)
    probs = e * pl.reciprocal(z, approx=True)                      # (N_CAND, TB)
    logp = (s - m) - jnp.log(z)                                    # (N_CAND, TB)

    # Categorical sample via inverse CDF: two VPU adds, no MXU. Clamped to {0,1,2} by
    # construction (never compares against the final cumulative term).
    u = u_ref[...]                                                 # (1, TB)
    cum0 = probs[0:1, :]
    cum1 = cum0 + probs[1:2, :]
    ge0 = u >= cum0
    ge1 = u >= cum1
    action = ge0.astype(jnp.float32) + ge1.astype(jnp.float32)     # (1, TB) in {0,1,2}

    # Select log_prob of the sampled action directly from the comparisons (no iota / no
    # float-equality one-hot).
    log_prob = jnp.where(ge1, logp[2:3, :],
                         jnp.where(ge0, logp[1:2, :], logp[0:1, :]))  # (1, TB)
    entropy = -jnp.sum(probs * logp, axis=0, keepdims=True)          # (1, TB)

    # Single lane-dense packed store: row0=action(f32), row1=log_prob, row2=entropy.
    out_ref[...] = jnp.concatenate([action, log_prob, entropy], axis=0)


def init_params(key):
    # Deterministic, PyTorch-Linear-style uniform init.
    k1, k2, k3, k4 = jax.random.split(key, 4)
    lim1 = 1.0 / jnp.sqrt(jnp.float32(IN_DIM))
    w1 = jax.random.uniform(k1, (IN_DIM, HIDDEN), jnp.float32, -lim1, lim1)
    b1 = jax.random.uniform(k2, (HIDDEN,), jnp.float32, -lim1, lim1)
    lim2 = 1.0 / jnp.sqrt(jnp.float32(HIDDEN))
    w2 = jax.random.uniform(k3, (HIDDEN, 1), jnp.float32, -lim2, lim2)
    b2 = jax.random.uniform(k4, (1,), jnp.float32, -lim2, lim2)
    return w1, b1, w2, b2


def pack_params(w1, b1, w2, b2):
    """Pre-transpose / pre-fold the MLP params once (reused for every forward call).

    Returns:
      w1s_bf: (HIDDEN, STATE_DIM) bf16 -- W1^T state-weight columns (MXU lhs).
      bias3:  (HIDDEN, N_CAND)    f32  -- per-candidate first-layer bias b1 + c * w1[id-col].
      w2row:  (1, HIDDEN)         f32  -- second-layer weights as a row (MXU lhs).
    b2 is dropped: all three outputs are invariant to a uniform score shift.
    """
    del b2
    w1t = w1.T.astype(jnp.float32)                                  # (HIDDEN, IN_DIM)
    w1s_bf = w1t[:, 1:].astype(jnp.bfloat16)                        # state columns
    w1id = w1t[:, 0:1]                                              # method-id column
    cand = jnp.arange(N_CAND, dtype=jnp.float32)[None, :]           # (1, N_CAND)
    bias3 = b1.astype(jnp.float32)[:, None] + w1id * cand           # (HIDDEN, N_CAND)
    w2row = w2.astype(jnp.float32).reshape(1, HIDDEN)
    return w1s_bf, bias3, w2row


def actor_forward_batch(states_t, u, w1s_bf, bias3, w2row):
    """Batched forward.

    states_t: (STATE_DIM, B) bf16 (batch on LANES -- producer-side layout, no wrapper
              pad/transpose HBM pass), u: (B,) uniforms in [0,1).
    Returns (action int32, log_prob f32, entropy f32), each shape (B,).
    """
    assert states_t.shape[0] == STATE_DIM
    B = states_t.shape[1]
    TB = _choose_tile(B)
    n_tiles = pl.cdiv(B, TB)                  # last block may be ragged; Pallas masks it.
    u2 = u.astype(jnp.float32).reshape(1, B)  # metadata-only reshape

    out = pl.pallas_call(
        actor_kernel,
        out_shape=jax.ShapeDtypeStruct((3, B), jnp.float32),
        grid_spec=pltpu.PrefetchScalarGridSpec(
            num_scalar_prefetch=0,
            grid=(n_tiles,),
            in_specs=[
                pl.BlockSpec((1, TB), lambda i: (0, i)),               # uniforms
                # If a bundle dump shows exposed state-read DMA (v5e/v6e at large TB),
                # add pipeline_mode=pl.Buffered(3) here.
                pl.BlockSpec((STATE_DIM, TB), lambda i: (0, i)),       # states^T (bf16)
                pl.BlockSpec((HIDDEN, STATE_DIM), lambda i: (0, 0)),   # W1 state cols (bf16)
                pl.BlockSpec((HIDDEN, N_CAND), lambda i: (0, 0)),      # folded biases
                pl.BlockSpec((1, HIDDEN), lambda i: (0, 0)),           # w2 row
            ],
            out_specs=pl.BlockSpec((3, TB), lambda i: (0, i)),         # packed lane-dense out
        ),
        compiler_params=pltpu.CompilerParams(
            dimension_semantics=("parallel",)),                        # v7x: 2 TCs split batch
    )(u2, states_t.astype(jnp.bfloat16), w1s_bf, bias3, w2row)

    action = out[0].astype(jnp.int32)    # torch Categorical would return int64
    log_prob = out[1]
    entropy = out[2]
    return action, log_prob, entropy


def actor_forward(state, u, w1s_bf, bias3, w2row):
    """Single-state forward matching Actor.forward(state) -> (action, log_prob, entropy)."""
    st_t = jnp.asarray(state, jnp.float32).reshape(STATE_DIM, 1).astype(jnp.bfloat16)
    a, lp, ent = actor_forward_batch(
        st_t, jnp.reshape(jnp.asarray(u, jnp.float32), (1,)), w1s_bf, bias3, w2row)
    return a[0], lp[0], ent[0]


def actor_ref(states, w1, b1, w2, b2, u):
    """Pure-JAX reference mirroring the PyTorch module (exact softmax / division).

    The W1 state-weight columns are bf16-quantized to match the kernel's data path, so the
    comparison isolates kernel correctness from the (intentional) bf16 input quantization.
    """
    hp = lax.Precision.HIGHEST
    B = states.shape[0]
    w1q = jnp.concatenate(
        [w1[0:1, :].astype(jnp.float32),
         w1[1:, :].astype(jnp.bfloat16).astype(jnp.float32)], axis=0)
    ids = jnp.arange(N_CAND, dtype=jnp.float32)
    x = jnp.concatenate(
        [jnp.broadcast_to(ids[None, :, None], (B, N_CAND, 1)),
         jnp.broadcast_to(states[:, None, :], (B, N_CAND, STATE_DIM))], axis=-1)  # (B,3,16)
    h = jnp.maximum(jnp.einsum('bci,ih->bch', x, w1q, precision=hp) + b1, 0.0)
    s = jnp.einsum('bch,ho->bco', h, w2, precision=hp)[..., 0] + b2[0]            # (B,3)
    m = s.max(-1, keepdims=True)
    e = jnp.exp(s - m)
    z = e.sum(-1, keepdims=True)
    probs = e / z
    logp = (s - m) - jnp.log(z)
    cum0 = probs[:, 0]
    cum1 = cum0 + probs[:, 1]
    action = (u >= cum0).astype(jnp.int32) + (u >= cum1).astype(jnp.int32)
    entropy = -(probs * logp).sum(-1)
    return action, logp, entropy


if __name__ == "__main__":
    key = jax.random.PRNGKey(0)
    pkey, skey, ukey = jax.random.split(key, 3)
    w1, b1, w2, b2 = init_params(pkey)
    w1s_bf, bias3, w2row = pack_params(w1, b1, w2, b2)

    # Small demo batch: tile = 128 lanes -> 2 grid tiles, the second one ragged (exercises
    # Pallas's implicit last-block padding). Producer emits states already as (STATE_DIM, B)
    # bf16 with batch on lanes, so the wrapper does no pad/transpose HBM pass.
    B = 200
    states_t = jax.random.normal(skey, (STATE_DIM, B), jnp.float32).astype(jnp.bfloat16)
    u = jax.random.uniform(ukey, (B,), jnp.float32)

    action, log_prob, entropy = actor_forward_batch(states_t, u, w1s_bf, bias3, w2row)
    jax.block_until_ready((action, log_prob, entropy))

    # Light verification against the pure-JAX reference (tolerances account for MXU rounding
    # and the approximate reciprocal in the kernel's softmax).
    a_ref, logp_ref, ent_ref = actor_ref(states_t.astype(jnp.float32).T, w1, b1, w2, b2, u)
    act = np.asarray(action)
    assert act.shape == (B,) and np.all((act >= 0) & (act < N_CAND)), "action out of range"
    lp_ref_at_act = np.asarray(jnp.take_along_axis(logp_ref, action[:, None], axis=-1)[:, 0])
    assert np.allclose(np.asarray(log_prob), lp_ref_at_act, atol=2e-2), "log_prob mismatch"
    assert np.allclose(np.asarray(entropy), np.asarray(ent_ref), atol=2e-2), "entropy mismatch"
    assert np.mean(act == np.asarray(a_ref)) >= 0.9, "sampled actions diverge from reference"

    # Single-state call matching the original module's forward(state) signature.
    a1, lp1, e1 = actor_forward(states_t[:, 0].astype(jnp.float32), u[0],
                                w1s_bf, bias3, w2row)
    jax.block_until_ready((a1, lp1, e1))
    assert np.isclose(float(lp1), float(log_prob[0]), atol=1e-4), "single-state mismatch"

    print("KERNEL_OK")
</pallas_src>

<mosaic_0001>
module attributes {stable_mosaic.version = 11 : i64} {
  func.func @actor_kernel(%arg0: i32, %arg1: memref<1x128xf32, #tpu.memory_space<vmem>>, %arg2: memref<15x128xbf16, #tpu.memory_space<vmem>>, %arg3: memref<32x15xbf16, #tpu.memory_space<vmem>>, %arg4: memref<32x3xf32, #tpu.memory_space<vmem>>, %arg5: memref<1x32xf32, #tpu.memory_space<vmem>>, %arg6: memref<3x128xf32, #tpu.memory_space<vmem>>) attributes {dimension_semantics = [#tpu.dimension_semantics<parallel>], iteration_bounds = array<i64: 2>, scalar_prefetch = 0 : i64, scratch_operands = 0 : i64, tpu.core_type = #tpu.core_type<tc>, window_params = [{transform_indices = @transform_0, window_bounds = array<i64: 1, 128>}, {transform_indices = @transform_1, window_bounds = array<i64: 15, 128>}, {pipeline_mode = #tpu.pipeline_mode<synchronous>, transform_indices = @transform_2, window_bounds = array<i64: 32, 15>}, {pipeline_mode = #tpu.pipeline_mode<synchronous>, transform_indices = @transform_3, window_bounds = array<i64: 32, 3>}, {pipeline_mode = #tpu.pipeline_mode<synchronous>, transform_indices = @transform_4, window_bounds = array<i64: 1, 32>}, {transform_indices = @transform_5, window_bounds = array<i64: 3, 128>}]} {
    %c0 = arith.constant 0 : index
    %c0_0 = arith.constant 0 : index
    %0 = vector.load %arg2[%c0, %c0_0] : memref<15x128xbf16, #tpu.memory_space<vmem>>, vector<15x128xbf16>
    %c0_1 = arith.constant 0 : index
    %c0_2 = arith.constant 0 : index
    %1 = vector.load %arg3[%c0_1, %c0_2] : memref<32x15xbf16, #tpu.memory_space<vmem>>, vector<32x15xbf16>
    %cst = arith.constant dense<0.000000e+00> : vector<32x128xf32>
    %2 = tpu.matmul %1, %0, %cst {dimension_numbers = #tpu.dot_dimension_numbers<[1], [0], [0], [1], [0, 0, 1, 1], [], []>} : vector<32x15xbf16>, vector<15x128xbf16>, vector<32x128xf32> -> vector<32x128xf32>
    %c0_3 = arith.constant 0 : index
    %c0_4 = arith.constant 0 : index
    %3 = vector.load %arg5[%c0_3, %c0_4] : memref<1x32xf32, #tpu.memory_space<vmem>>, vector<1x32xf32>
    %c0_5 = arith.constant 0 : index
    %c0_6 = arith.constant 0 : index
    %4 = vector.load %arg4[%c0_5, %c0_6] : memref<32x3xf32, #tpu.memory_space<vmem>>, vector<32x1xf32>
    %5 = vector.broadcast %4 : vector<32x1xf32> to vector<32x128xf32>
    %6 = arith.addf %2, %5 : vector<32x128xf32>
    %cst_7 = arith.constant 0.000000e+00 : f32
    %7 = vector.broadcast %cst_7 : f32 to vector<32x128xf32>
    %8 = arith.maximumf %6, %7 : vector<32x128xf32>
    %cst_8 = arith.constant dense<0.000000e+00> : vector<1x128xf32>
    %9 = tpu.matmul %3, %8, %cst_8 {dimension_numbers = #tpu.dot_dimension_numbers<[1], [0], [0], [1], [0, 0, 1, 1], [], []>} : vector<1x32xf32>, vector<32x128xf32>, vector<1x128xf32> -> vector<1x128xf32>
    %c0_9 = arith.constant 0 : index
    %c1 = arith.constant 1 : index
    %10 = vector.load %arg4[%c0_9, %c1] : memref<32x3xf32, #tpu.memory_space<vmem>>, vector<32x1xf32>
    %11 = vector.broadcast %10 : vector<32x1xf32> to vector<32x128xf32>
    %12 = arith.addf %2, %11 : vector<32x128xf32>
    %cst_10 = arith.constant 0.000000e+00 : f32
    %13 = vector.broadcast %cst_10 : f32 to vector<32x128xf32>
    %14 = arith.maximumf %12, %13 : vector<32x128xf32>
    %cst_11 = arith.constant dense<0.000000e+00> : vector<1x128xf32>
    %15 = tpu.matmul %3, %14, %cst_11 {dimension_numbers = #tpu.dot_dimension_numbers<[1], [0], [0], [1], [0, 0, 1, 1], [], []>} : vector<1x32xf32>, vector<32x128xf32>, vector<1x128xf32> -> vector<1x128xf32>
    %c0_12 = arith.constant 0 : index
    %c2 = arith.constant 2 : index
    %16 = vector.load %arg4[%c0_12, %c2] : memref<32x3xf32, #tpu.memory_space<vmem>>, vector<32x1xf32>
    %17 = vector.broadcast %16 : vector<32x1xf32> to vector<32x128xf32>
    %18 = arith.addf %2, %17 : vector<32x128xf32>
    %cst_13 = arith.constant 0.000000e+00 : f32
    %19 = vector.broadcast %cst_13 : f32 to vector<32x128xf32>
    %20 = arith.maximumf %18, %19 : vector<32x128xf32>
    %cst_14 = arith.constant dense<0.000000e+00> : vector<1x128xf32>
    %21 = tpu.matmul %3, %20, %cst_14 {dimension_numbers = #tpu.dot_dimension_numbers<[1], [0], [0], [1], [0, 0, 1, 1], [], []>} : vector<1x32xf32>, vector<32x128xf32>, vector<1x128xf32> -> vector<1x128xf32>
    %22 = tpu.concatenate %9, %15, %21 in 0 : vector<1x128xf32>, vector<1x128xf32>, vector<1x128xf32> -> vector<3x128xf32>
    %cst_15 = arith.constant dense<0xFF800000> : vector<128xf32>
    %23 = vector.multi_reduction <maximumf>, %22, %cst_15 [0] : vector<3x128xf32> to vector<128xf32>
    %24 = vector.shape_cast %23 : vector<128xf32> to vector<1x128xf32>
    %25 = vector.broadcast %24 : vector<1x128xf32> to vector<3x128xf32>
    %26 = arith.subf %22, %25 : vector<3x128xf32>
    %27 = math.exp %26 : vector<3x128xf32>
    %cst_16 = arith.constant dense<0.000000e+00> : vector<128xf32>
    %28 = vector.multi_reduction <add>, %27, %cst_16 [0] : vector<3x128xf32> to vector<128xf32>
    %29 = vector.shape_cast %28 : vector<128xf32> to vector<1x128xf32>
    %30 = tpu.reciprocal %29 {approx = true} : vector<1x128xf32> -> vector<1x128xf32>
    %31 = vector.broadcast %30 : vector<1x128xf32> to vector<3x128xf32>
    %32 = arith.mulf %27, %31 : vector<3x128xf32>
    %33 = vector.broadcast %24 : vector<1x128xf32> to vector<3x128xf32>
    %34 = arith.subf %22, %33 : vector<3x128xf32>
    %35 = math.log %29 : vector<1x128xf32>
    %36 = vector.broadcast %35 : vector<1x128xf32> to vector<3x128xf32>
    %37 = arith.subf %34, %36 : vector<3x128xf32>
    %c0_17 = arith.constant 0 : index
    %c0_18 = arith.constant 0 : index
    %38 = vector.load %arg1[%c0_17, %c0_18] : memref<1x128xf32, #tpu.memory_space<vmem>>, vector<1x128xf32>
    %39 = vector.extract_strided_slice %32 {offsets = [0, 0], sizes = [1, 128], strides = [1, 1]} : vector<3x128xf32> to vector<1x128xf32>
    %40 = vector.extract_strided_slice %32 {offsets = [1, 0], sizes = [1, 128], strides = [1, 1]} : vector<3x128xf32> to vector<1x128xf32>
    %41 = arith.addf %39, %40 : vector<1x128xf32>
    %42 = arith.cmpf oge, %38, %39 : vector<1x128xf32>
    %43 = arith.cmpf oge, %38, %41 : vector<1x128xf32>
    %44 = arith.extui %42 : vector<1x128xi1> to vector<1x128xi32>
    %45 = arith.sitofp %44 : vector<1x128xi32> to vector<1x128xf32>
    %46 = arith.extui %43 : vector<1x128xi1> to vector<1x128xi32>
    %47 = arith.sitofp %46 : vector<1x128xi32> to vector<1x128xf32>
    %48 = arith.addf %45, %47 : vector<1x128xf32>
    %49 = vector.extract_strided_slice %37 {offsets = [2, 0], sizes = [1, 128], strides = [1, 1]} : vector<3x128xf32> to vector<1x128xf32>
    %50 = vector.extract_strided_slice %37 {offsets = [1, 0], sizes = [1, 128], strides = [1, 1]} : vector<3x128xf32> to vector<1x128xf32>
    %51 = vector.extract_strided_slice %37 {offsets = [0, 0], sizes = [1, 128], strides = [1, 1]} : vector<3x128xf32> to vector<1x128xf32>
    %52 = arith.select %42, %50, %51 : vector<1x128xi1>, vector<1x128xf32>
    %53 = arith.select %43, %49, %52 : vector<1x128xi1>, vector<1x128xf32>
    %54 = arith.mulf %32, %37 : vector<3x128xf32>
    %cst_19 = arith.constant dense<0.000000e+00> : vector<128xf32>
    %55 = vector.multi_reduction <add>, %54, %cst_19 [0] : vector<3x128xf32> to vector<128xf32>
    %56 = vector.shape_cast %55 : vector<128xf32> to vector<1x128xf32>
    %cst_20 = arith.constant 0.000000e+00 : f32
    %57 = vector.broadcast %cst_20 : f32 to vector<1x128xf32>
    %58 = arith.subf %57, %56 : vector<1x128xf32>
    %59 = tpu.concatenate %48, %53, %58 in 0 : vector<1x128xf32>, vector<1x128xf32>, vector<1x128xf32> -> vector<3x128xf32>
    %c0_21 = arith.constant 0 : index
    %c0_22 = arith.constant 0 : index
    %60 = vector.load %arg6[%c0_21, %c0_22] : memref<3x128xf32, #tpu.memory_space<vmem>>, vector<3x128xf32>
    tpu.vector_store %arg6[%c0_21, %c0_22], %59 {strides = array<i32>} : memref<3x128xf32, #tpu.memory_space<vmem>>, vector<3x128xf32>,
    return
  }
  func.func @transform_0(%arg0: i32) -> (i32, i32) {
    %c0_i32 = arith.constant 0 : i32
    %c0_i32_0 = arith.constant 0 : i32
    return %c0_i32, %arg0 : i32, i32
  }
  func.func @transform_1(%arg0: i32) -> (i32, i32) {
    %c0_i32 = arith.constant 0 : i32
    %c0_i32_0 = arith.constant 0 : i32
    return %c0_i32, %arg0 : i32, i32
  }
  func.func @transform_2(%arg0: i32) -> (i32, i32) {
    %c0_i32 = arith.constant 0 : i32
    %c0_i32_0 = arith.constant 0 : i32
    %c0_i32_1 = arith.constant 0 : i32
    return %c0_i32, %c0_i32_0 : i32, i32
  }
  func.func @transform_3(%arg0: i32) -> (i32, i32) {
    %c0_i32 = arith.constant 0 : i32
    %c0_i32_0 = arith.constant 0 : i32
    %c0_i32_1 = arith.constant 0 : i32
    return %c0_i32, %c0_i32_0 : i32, i32
  }
  func.func @transform_4(%arg0: i32) -> (i32, i32) {
    %c0_i32 = arith.constant 0 : i32
    %c0_i32_0 = arith.constant 0 : i32
    %c0_i32_1 = arith.constant 0 : i32
    return %c0_i32, %c0_i32_0 : i32, i32
  }
  func.func @transform_5(%arg0: i32) -> (i32, i32) {
    %c0_i32 = arith.constant 0 : i32
    %c0_i32_0 = arith.constant 0 : i32
    return %c0_i32, %arg0 : i32, i32
  }
}

</mosaic_0001>

<bundles_post_ra>
// kernel: tpu_custom_call.1
= control target key start
LH: loop header
LB: loop body
LE: loop exit
PB: predicated region body
PF: predicated region fallthrough
CT: control target
= control target key end

     0   :  { %10 = vsyncpa [#allocation4], 0  ;;  %s1247_s0 = inlined_call_operand.vmem [shape: f32[1,200], index: 0, kind: input, shape index: {}]   ;;  %s1248_s1 = inlined_call_operand.vmem [shape: bf16[15,200], index: 1, kind: input, shape index: {}]   ;;  %s1249_s2 = inlined_call_operand.vmem [shape: bf16[32,15], index: 2, kind: input, shape index: {}]   ;;  %s1250_s3 = inlined_call_operand.vmem [shape: f32[32,3], index: 3, kind: input, shape index: {}]   ;;  %s1251_s4 = inlined_call_operand.vmem [shape: f32[1,32], index: 4, kind: input, shape index: {}]   ;;  %s1252_s5 = inlined_call_operand.hbm [shape: f32[3,200], index: 5, kind: output, shape index: {}]  }
   0x1   :  { %12 = vsyncpa [#allocation4 + $0x1], 0  ;;  %s1086_s18 = smov 0   ;;  %s1088_s19 = smov 0  }
   0x2   :  { %s1090_s20 = smov 0   ;;  %s1092_s21 = smov 0  }
   0x3 LB: > { %s1107_s22 = sadd.s32 4294967295, %s1046_s21   ;;  %s843_s23 = sadd.s32 4294967294, %s1046_s21   ;;  %s1046_s21 = sphi %s1092_s21, %s1258_s21   ;;  %s1042_s20 = sphi %s1090_s20, %s1257_s20   ;;  %s1038_s19 = sphi %s1088_s19, %s1256_s19   ;;  %s1034_s18 = sphi %s1086_s18, %s1255_s18  }
   0x4   : > { %s1111_s24 = sadd.s32 1, %s1046_s21   ;;  %s51_s25 = sadd.s32 1, %s1042_s20 }
   0x5   : > { %s48_s26 = ssub.s32 %s1046_s21, %s1111_s24  ;;  %p58_p0 = scmp.ne.s32.totalorder %s1042_s20, %s1038_s19 }
   0x6   : > { %p49_p1 = scmp.eq.s32.totalorder %s48_s26, 0  ;;  %p59_p2 = scmp.eq.s32.totalorder %s1046_s21, 0 }
   0x7   : > { %p151_p3 = scmp.eq.s32.totalorder %s1107_s22, 1  ;;  %p156_p4 = scmp.ne.s32.totalorder %s1038_s19, %s1034_s18 }
   0x8   : > { %s1123_s27 = scalar_select %p49_p1, %s1042_s20, %s51_s25  }
   0x9   : > { %p60_p5 = por %p59_p2, %p58_p0  ;;  %p1125_p6 = por %p151_p3, %p58_p0 }
   0xa   : > { %p157_p7 = scmp.eq.s32.totalorder %s843_s23, 1  ;;  %p845_p9 = scmp.ge.s32.totalorder %s1046_s21, 2 }
   0xc   : > { %p1129_p8 = por %p157_p7, %p156_p4  ;;  %182 = sbr.rel (%p845_p9) target bundleno = 22 (0x16), region = 28 }
  0x11   : > { %191 = sbr.rel (!%p60_p5) target bundleno = 22 (0x16), region = 36  ;;  %s193_s30 = sand.u32 (%p60_p5), 1, %s1042_s20  }
  0x12   : > { %s847_s6 = sshll.u32 (%p60_p5), %s1046_s21, 2  ;;  %s846_s7 = sshll.u32 (%p60_p5), %s193_s30, 3 }
  0x13   : > { %s197_s10 = scalar_lea.vmem (%p60_p5), %s1248_s1, %s847_s6  ;;  %s195_s11 = scalar_lea.vmem (%p60_p5), [#allocation2], %s846_s7 }
  0x14   : > { %v214_v0 = vld [vmem:[%s197_s10] sm:$0xf] (%p60_p5)  ;;  %v216_v1 = vld [vmem:[%s197_s10 + $0x8] sm:$0xf] (%p60_p5) }
  0x15   : > { %215 = vst [vmem:[%s195_s11] sm:$0xf] (%p60_p5), %v214_v0  ;;  %217 = vst [vmem:[%s195_s11 + $0x4] sm:$0xf] (%p60_p5), %v216_v1 }
  0x16 PF: > { %p848_p10 = scmp.ge.s32.totalorder %s1046_s21, 1  ;;  %p244_p11 = scmp.lt.s32.totalorder %s1046_s21, 3 }
  0x18   : > { %p245_p12 = pnand %p848_p10, %p244_p11 }
  0x19   : > { %s1144_s12 = sand.u32 (!%p245_p12), 1, %s1038_s19   ;;  %p281_p13 = scmp.lt.s32.totalorder (!%p245_p12), %s1107_s22, 1 }
  0x1a   : > { %248 = sbr.rel (%p245_p12) target bundleno = 547 (0x223), region = 77  ;;  %s849_s13 = sshll.u32 (!%p245_p12), %s1144_s12, 3 }
  0x1b   : > { %s253_s16 = scalar_lea.vmem (!%p245_p12), [#allocation2], %s849_s13  ;;  %s850_s23 = sshll.u32 (!%p245_p12), %s1144_s12, 2 }
  0x1c   : > { %s862_s25 = sshll.u32 (!%p245_p12), %s1107_s22, 6  ;;  %s280_s26 = scalar_lea.vmem (!%p245_p12), [#allocation3], %s850_s23 }
  0x1d   : > { %s769_s30 = sshll.u32 (!%p245_p12), %s280_s26, 4  ;;  %s1209_s8 = scalar_lea.hbm (!%p245_p12), %s1252_s5, %s862_s25  ;;  %s770_s30 = int_to_ptr.vmem [resolvable:$true] %s769_s30 }
  0x1e   : > { %s756_s9 = scalar_lea.sflag (!%p245_p12), [#allocation4], %s1144_s12  ;;  %s986_s10 = scalar_lea.vmem (!%p245_p12), %s770_s30, 64 }
  0x1f   : > { %vm313_vm0 = vcmask 1046528   ;;  %vm314_vm1 = vcmask 1047552   ;;  %v1048_v2 = vmov 65535   ;;  %v978_v4 = vld [vmem:[%s1249_s2] sm:$0xff]   ;;  %vm306_vm2 = vcmask 121856   ;;  %v371_v8 = vld [vmem:[%s1250_s3 + $0x8] sm:$0xff]  ;;  %p987_p0 = scmp.ne.s32.totalorder %s770_s30, %s986_s10 }
  0x20   : > { %v315_v3 = vsel %vm313_vm0, 4294967295, %v1048_v2  ;;  %v977_v6 = vld [vmem:[%s253_s16] sm:$0xff]   ;;  %885 = vmatprep.mubr.msk.bf16.mxu0 %vm306_vm2, %v978_v4  ;;  %v1049_v7 = vmov 0   ;;  %v373_v10 = vld [vmem:[%s1250_s3 + $0x18] sm:$0xff]  ;;  %v372_v13 = vld [vmem:[%s1250_s3 + $0x10] sm:$0xff]  ;;  %v1050_v14 = vmov 2  }
  0x21   : > { %v316_v5 = vsel %vm314_vm1, %v315_v3, 0  ;;  %969 = vset.pattern.permute.xlu1 %v1049_v7  ;;  %968 = vset.pattern.permute.xlu0 %v1049_v7  ;;  %v370_v11 = vld [vmem:[%s1250_s3] sm:$0xff]  ;;  %v979_v12 = vld [vmem:[%s1249_s2 + $0x8] sm:$0xff]   ;;  %v1051_v15 = vmov 1   ;;  %v1052_v16 = vmov 0.0   ;;  %vm1053_vm3 = vmmov 0   ;;  %p988_p1 = pnand %p987_p0, %p1125_p6 }
  0x22   : > { %v318_v9 = vand.u32 %v977_v6, %v316_v5  ;;  %381 = vperm.xlu1 %969, %v371_v8   ;;  %391 = vperm.xlu0 %968, %v373_v10   ;;  %v369_v48 = vld [vmem:[%s1251_s4] sm:$0x1]  ;;  %vm402_vm4 = vcmask 261120   ;;  %vm670_vm5 = vcmask 1040384   ;;  %vm672_vm6 = vcmask 1041408   ;;  %s282_s14 = scalar_select %p281_p13, %s1107_s22, 1 }
  0x23   : > { %889 = vmatprep.subr.mxu1 %v1052_v16  ;;  %897 = vmatprep.mubr.msk.f32.mxu1 %vm1053_vm3, %v1052_v16  ;;  %vm674_vm7 = vcmask 1042432   ;;  %p989_p2 = pneg %p988_p1  ;;  %s1055_s22 = smov [#allocation3]  }
  0x24   : > { %883 = vmatprep.subr.bf16.mxu0 %v318_v9  ;;  %s283_s17 = scalar_lea.vmem %s1247_s0, %s282_s14  ;;  %s990_s11 = sshll.u32 %s1055_s22, 4  ;;  %s991_s11 = int_to_ptr.vmem [resolvable:$false] %s990_s11 }
  0x25   : > { %884 = vmatpush3.bf16.msra.mxu0 %v318_v9  ;;  %s992_s13 = scalar_lea.vmem %s991_s11, 128  ;;  %p993_p3 = scmp.lt.s32.totalorder %s770_s30, %s991_s11 }
  0x26   : > { %376 = vperm.xlu1 %969, %v370_v11   ;;  %386 = vperm.xlu0 %968, %v372_v13   ;;  %p994_p4 = scmp.lt.s32.totalorder %s992_s13, %s986_s10 }
  0x27   : > { %900 = vmatprep.subr.mxu0 %v1052_v16 }
  0x28   : > { %886 = vmatmul.mubr.msk.bf16.vlgmr.msra.gmra.mxu0 %vm306_vm2, %v979_v12  ;;  %p995_p5 = por %p994_p4, %p993_p3 }
  0x29   : > { %908 = vmatprep.mubr.msk.f32.mxu0 %vm1053_vm3, %v1052_v16 }
  0x2a   : > { %971 = vset.pattern.permute.xlu1 %v1050_v14  ;;  %970 = vset.pattern.permute.xlu0 %v1051_v15  ;;  %p996_p7 = pnand %p995_p5, %p989_p2 }
  0x2b   : > { %583 = vperm.xlu1 %971, %v373_v10   ;;  %489 = vperm.xlu0 %970, %v373_v10  }
  0x2f   : > { %972 = vset.pattern.permute.xlu1 %v1051_v15  ;;  %973 = vset.pattern.permute.xlu0 %v1050_v14 }
  0x30   : > { %485 = vperm.xlu1 %972, %v372_v13   ;;  %579 = vperm.xlu0 %973, %v372_v13  }
  0x34   : > { %481 = vperm.xlu1 %972, %v371_v8   ;;  %975 = vset.pattern.permute.xlu0 %v1051_v15 }
  0x35   : > { %477 = vperm.xlu0 %975, %v370_v11  }
  0x38   : > { %974 = vset.pattern.permute.xlu1 %v1050_v14 }
  0x39   : > { %575 = vperm.xlu1 %974, %v371_v8   ;;  %976 = vset.pattern.permute.xlu0 %v1050_v14 }
  0x3d   : > { %571 = vperm.xlu1 %974, %v370_v11  }
  0x9d   : > { %v382_v17 = vpop.permute.xlu1 %381  ;;  %v392_v18 = vpop.permute.xlu0 %391 }
  0xa1   : > { %v377_v19 = vpop.permute.xlu1 %376  ;;  %v387_v20 = vpop.permute.xlu0 %386 }
  0xa6   : > { %v584_v21 = vpop.permute.xlu1 %583  ;;  %v490_v22 = vpop.permute.xlu0 %489 }
  0xab   : > { %v486_v23 = vpop.permute.xlu1 %485  ;;  %v580_v24 = vpop.permute.xlu0 %579 }
  0xaf   : > { %v482_v27 = vpop.permute.xlu1 %481 }
  0xb0   : > { %v478_v33 = vpop.permute.xlu0 %477 }
  0xb4   : > { %v576_v39 = vpop.permute.xlu1 %575 }
  0xb8   : > { %v572_v51 = vpop.permute.xlu1 %571 }
  0xe8   : > { %v887_v25 = vpop.f32.mrf.mxu0 }
  0xe9   : > { %v494_v29 = vadd.f32 %v887_v25, %v486_v23  ;;  %v396_v32 = vadd.f32 %v887_v25, %v387_v20  ;;  %v588_v49 = vadd.f32 %v887_v25, %v580_v24  ;;  %v713_v24 = vlaneseq }
  0xea   : > { %v354_v26 = vpop.f32.mrf.mxu0 }
  0xeb   : > { %v498_v40 = vmax.f32 %v494_v29, 0.0  ;;  %v492_v41 = vadd.f32 %v478_v33, %v354_v26  ;;  %v394_v42 = vadd.f32 %v377_v19, %v354_v26  ;;  %v400_v43 = vmax.f32 %v396_v32, 0.0 }
  0xec   : > { %v888_v28 = vpop.f32.mrf.mxu0  ;;  %v592_v54 = vmax.f32 %v588_v49, 0.0  ;;  %v586_v55 = vadd.f32 %v572_v51, %v354_v26  ;;  %v714_v26 = vshrl.u32 %v713_v24, 7 }
  0xed   : > { %v495_v30 = vadd.f32 %v888_v28, %v490_v22  ;;  %v397_v31 = vadd.f32 %v888_v28, %v392_v18  ;;  %v589_v45 = vadd.f32 %v888_v28, %v584_v21  ;;  %v496_v47 = vmax.f32 %v492_v41, 0.0 }
  0xee   : > { %v357_v34 = vpop.f32.mrf.mxu0  ;;  %v398_v50 = vmax.f32 %v394_v42, 0.0  ;;  %v590_v57 = vmax.f32 %v586_v55, 0.0  ;;  %v1054_v22 = vmov 1966171168  }
  0xef   : > { %v499_v35 = vmax.f32 %v495_v30, 0.0  ;;  %v493_v36 = vadd.f32 %v482_v27, %v357_v34  ;;  %v395_v37 = vadd.f32 %v382_v17, %v357_v34  ;;  %v401_v38 = vmax.f32 %v397_v31, 0.0 }
  0xf0   : > { %v593_v52 = vmax.f32 %v589_v45, 0.0  ;;  %v587_v53 = vadd.f32 %v576_v39, %v357_v34  ;;  %v711_v23 = vunpack.c.l.s4 %v1054_v22 }
  0xf1   : > { %901 = vmatpush3.msra.mxu0 %v499_v35  ;;  %890 = vmatpush3.msra.mxu1 %v401_v38  ;;  %v497_v44 = vmax.f32 %v493_v36, 0.0  ;;  %v399_v46 = vmax.f32 %v395_v37, 0.0  ;;  %v697_v36 = vld [vmem:[%s283_s17] sm:$0x1] }
  0xf2   : > { %902 = vmatprep.subr.mxu0 %v1052_v16  ;;  %891 = vmatprep.subr.mxu1 %v1052_v16  ;;  %v591_v56 = vmax.f32 %v587_v53, 0.0  ;;  %v712_v25 = vunpack.c.0.s8 %v711_v23 }
  0xf3   : > { %903 = vmatpush3.msra.mxu0 %v498_v40  ;;  %892 = vmatpush3.msra.mxu1 %v400_v43 }
  0xf4   : > { %904 = vmatprep.subr.mxu0 %v1052_v16  ;;  %893 = vmatprep.subr.mxu1 %v1052_v16  ;;  %v715_v31 = vsub.s32 %v712_v25, %v714_v26 }
  0xf5   : > { %905 = vmatpush3.msra.mxu0 %v497_v44  ;;  %894 = vmatpush3.msra.mxu1 %v399_v46 }
  0xf6   : > { %906 = vmatprep.subr.mxu0 %v1052_v16  ;;  %895 = vmatprep.subr.mxu1 %v1052_v16 }
  0xf7   : > { %907 = vmatpush3.msra.mxu0 %v496_v47  ;;  %896 = vmatpush3.msra.mxu1 %v398_v50  ;;  %v749_v47 = vsub.s32 0, %v714_v26 }
  0xf8   : > { %909 = vmatmul.mubr.msk.f32.vlgmr.msra.gmra.mxu0 %vm402_vm4, %v369_v48  ;;  %898 = vmatmul.mubr.msk.f32.vlgmr.msra.gmra.mxu1 %vm402_vm4, %v369_v48 }
  0xf9   : > { %911 = vmatprep.subr.mxu1 %v1052_v16  ;;  %919 = vmatprep.mubr.msk.f32.mxu1 %vm1053_vm3, %v1052_v16 }
  0xfa   : > { %912 = vmatpush3.msra.mxu1 %v593_v52 }
  0xfb   : > { %913 = vmatprep.subr.mxu1 %v1052_v16 }
  0xfc   : > { %914 = vmatpush3.msra.mxu1 %v592_v54 }
  0xfd   : > { %915 = vmatprep.subr.mxu1 %v1052_v16 }
  0xfe   : > { %916 = vmatpush3.msra.mxu1 %v591_v56 }
  0xff   : > { %917 = vmatprep.subr.mxu1 %v1052_v16 }
 0x100   : > { %918 = vmatpush3.msra.mxu1 %v590_v57 }
 0x101   : > { %920 = vmatmul.mubr.msk.f32.vlgmr.msra.gmra.mxu1 %vm402_vm4, %v369_v48 }
 0x1b8   : > { %v566_v58 = vpop.f32.mrf.mxu0  ;;  %v472_v59 = vpop.f32.mrf.mxu1 }
 0x1b9   : > { %v665_v62 = vrot.slane %v566_v58, 7 }
 0x1ba   : > { %v910_v60 = vpop.f32.mrf.mxu0  ;;  %v899_v61 = vpop.f32.mrf.mxu1 }
 0x1bb   : > { %v671_v1 = vsel %vm670_vm5, %v472_v59, %v665_v62 }
 0x1c1   : > { %v660_v63 = vpop.f32.mrf.mxu1 }
 0x1c2   : > { %v668_v0 = vrot.slane %v660_v63, 6 }
 0x1c3   : > { %v921_v2 = vpop.f32.mrf.mxu1 }
 0x1c4   : > { %v673_v3 = vsel %vm672_vm6, %v671_v1, %v668_v0 }
 0x1c5   : > { %v675_v4 = vsel %vm674_vm7, %v673_v3, -inf }
 0x1c6   : > { %v676_v5 = vrot.slane %v675_v4, 4 }
 0x1c8   : > { %v677_v6 = vmax.f32 %v675_v4, %v676_v5 }
 0x1ca   : > { %v678_v7 = vrot.slane %v677_v6, 2 }
 0x1cc   : > { %v679_v8 = vmax.f32 %v677_v6, %v678_v7 }
 0x1ce   : > { %v680_v9 = vrot.slane %v679_v8, 1 }
 0x1d0   : > { %v681_v10 = vmax.f32 %v679_v8, %v680_v9 }
 0x1d2   : > { %v682_v11 = vsub.f32 %v673_v3, %v681_v10 }
 0x1d4   : > { %v683_v12 = vmul.f32 1.442695, %v682_v11 }
 0x1d6   : > { %980 = vpow2.f32 %v683_v12 }
 0x1e3   : > { %v981_v13 = vpop.eup %980 }
 0x1e4   : > { %v685_v14 = vsel %vm674_vm7, %v981_v13, 0.0 }
 0x1e5   : > { %v686_v15 = vrot.slane %v685_v14, 4 }
 0x1e7   : > { %v687_v17 = vadd.f32 %v686_v15, %v685_v14 }
 0x1e9   : > { %v688_v18 = vrot.slane %v687_v17, 2 }
 0x1eb   : > { %v689_v19 = vadd.f32 %v688_v18, %v687_v17 }
 0x1ed   : > { %v690_v20 = vrot.slane %v689_v19, 1 }
 0x1ef   : > { %v691_v21 = vadd.f32 %v690_v20, %v689_v19 }
 0x1f1   : > { %982 = vrcp.f32 %v691_v21 }
 0x1f2   : > { %984 = vlog2.f32 %v691_v21 }
 0x1fe   : > { %v983_v27 = vpop.eup %982 }
 0x1ff   : > { %v985_v28 = vpop.eup %984  ;;  %v693_v29 = vmul.f32 %v983_v27, %v981_v13 }
 0x200   : > { %v695_v30 = vmul.f32 0.6931472, %v985_v28 }
 0x201   : > { %v699_v35 = vrot.slane %v693_v29, 1  ;;  %vm702_vm8 = vcmp.ge.f32.partialorder %v697_v36, %v693_v29 }
 0x202   : > { %v696_v32 = vsub.f32 %v682_v11, %v695_v30  ;;  %v859_v53 = vsel %vm702_vm8, 1.0, %v1052_v16 }
 0x203   : > { %v701_v42 = vadd.f32 %v699_v35, %v693_v29 }
 0x204   : > { %v716_v33 = vrot.slane %v696_v32, %v715_v31  ;;  %v737_v34 = vmul.f32 %v696_v32, %v693_v29 }
 0x205   : > { %vm703_vm9 = vcmp.ge.f32.partialorder %v697_v36, %v701_v42 }
 0x206   : > { %v717_v37 = vcombine.high %v716_v33, %v716_v33  ;;  %v724_v38 = vrot.slane %v716_v33, %v715_v31  ;;  %v738_v39 = vsel %vm674_vm7, %v737_v34, 0.0  ;;  %v860_v50 = vsel %vm703_vm9, 1.0, %v1052_v16 }
 0x207   : > { %v739_v40 = vrot.slane %v738_v39, 4  ;;  %v708_v55 = vadd.f32 %v860_v50, %v859_v53 }
 0x208   : > { %v731_v41 = vrot.slane %v717_v37, %v715_v31  ;;  %v734_v43 = vcombine.high %v724_v38, %v724_v38 }
 0x209   : > { %v740_v44 = vadd.f32 %v739_v40, %v738_v39 }
 0x20a   : > { %v733_v45 = vsel %vm702_vm8, %v731_v41, %v696_v32 }
 0x20b   : > { %v741_v46 = vrot.slane %v740_v44, 2  ;;  %v736_v48 = vsel %vm703_vm9, %v734_v43, %v733_v45 }
 0x20c   : > { %v750_v52 = vrot.slane %v736_v48, %v749_v47 }
 0x20d   : > { %v742_v49 = vadd.f32 %v741_v46, %v740_v44 }
 0x20e   : > { %v752_v57 = vsel %vm670_vm5, %v708_v55, %v750_v52 }
 0x20f   : > { %v743_v51 = vrot.slane %v742_v49, 1 }
 0x211   : > { %v744_v54 = vadd.f32 %v743_v51, %v742_v49 }
 0x213   : > { %v745_v56 = vsub.f32 0.0, %v744_v54 }
 0x215   : > { %v753_v58 = vsel %vm672_vm6, %v752_v57, %v745_v56 }
 0x216   : > { %754 = vst [vmem:[%s280_s26] sm:$0x7] %v753_v58 }
 0x217   : > { %999 = shalt.err (!%p996_p7)
}
 0x218   : > { %s1000_s14 = scalar_lea.hbm %s1209_s8, 64  ;;  %s1004_s16 = scalar_lea.hbm %s1252_s5, 128 }
 0x219   : > { %p1001_p10 = scmp.ne.s32.totalorder %s1209_s8, %s1000_s14  ;;  %p1005_p13 = scmp.lt.s32.totalorder %s1209_s8, %s1252_s5 }
 0x21a   : > { %p1006_p0 = scmp.lt.s32.totalorder %s1004_s16, %s1000_s14 }
 0x21b   : > { %p1002_p11 = pnand %p1001_p10, %p1125_p6 }
 0x21c   : > { %p1007_p1 = por %p1006_p0, %p1005_p13 }
 0x21d   : > { %p1003_p12 = pneg %p1002_p11 }
 0x21f   : > { %p1008_p2 = pnand %p1007_p1, %p1003_p12 }
 0x221   : > { %1011 = shalt.err (!%p1008_p2)
}
 0x222   : > { %922 = dma.vmem_to_hbm [thread:$0]  (%p1125_p6), %s770_s30, 64, %s1209_s8, %s756_s9  }
 0x223 PF: > { %s781_s25 = sand.u32 1, %s1034_s18   ;;  %p925_p3 = pnand %p845_p9, %p1129_p8 }
 0x224   : > { %s782_s26 = scalar_lea.sflag [#allocation4], %s781_s25 }
 0x225   : > { %p926_p4 = pneg %p925_p3 }
 0x227   : > { %1029 = dma.done.wait (%p926_p4), %s782_s26, 64  }
 0x228   : > { %1031 = vsyncadd (%p926_p4), %s782_s26, 4294967232  ;;  %p15_p5 = scmp.ge.s32.totalorder %s1111_s24, 4   ;;  %s1255_s18 = smov %s1038_s19 }
 0x229   : > { %s1256_s19 = smov %s1042_s20  ;;  %s1257_s20 = smov %s1123_s27 }
 0x22a   : > { %s1258_s21 = smov %s1111_s24  ;;  %17 = sbr.rel (!%p15_p5) target bundleno = 3 (0x3), region = 124 }
 0x22f   :  { %787 = vsyncpa [#allocation4], 1 }
 0x230   :  { %789 = vsyncpa [#allocation4 + $0x1], 1 }

</bundles_post_ra>
